<compile_context>
chip_gen: v6e
topology: v6e:2x2x1
jax: 0.10.0
libtpu: 0.0.40
codegen_flags: <defaults>
</compile_context>

<pallas_src>
import functools
import math

import jax
import jax.numpy as jnp
from jax import lax
from jax.experimental import pallas as pl
from jax.experimental.pallas import tpu as pltpu


def _gaussian_noise_kernel(seed_ref, x_ref, o_ref, *, std, mean):
    tm, tn = x_ref.shape
    step = pl.program_id(0)

    # ---- per-element unique 32-bit counter: global element id mixed with seed ----
    row = lax.broadcasted_iota(jnp.int32, (tm, tn), 0)
    col = lax.broadcasted_iota(jnp.int32, (tm, tn), 1)
    lin = (step * tm + row) * tn + col                       # global element id
    c = lin.astype(jnp.uint32) + seed_ref[0].astype(jnp.uint32) * jnp.uint32(0x9E3779B9)

    # ---- counter -> well-mixed 32 random bits (splitmix / murmur3 finalizer) ----
    h = c * jnp.uint32(0x9E3779B1)
    h = h ^ (h >> 16)
    h = h * jnp.uint32(0x85EBCA6B)
    h = h ^ (h >> 13)
    h = h * jnp.uint32(0xC2B2AE35)
    h = h ^ (h >> 16)

    # ---- top 24 bits -> uniform in (0, 1), exclusive at both ends ----
    u24 = (h >> 8).astype(jnp.int32).astype(jnp.float32)     # [0, 2^24)
    u = (u24 + 0.5) * jnp.float32(1.0 / (1 << 24))

    # ---- inverse normal CDF: z = sqrt(2) * erfinv(2u - 1)  (Giles 2010 approx) ----
    xg = 2.0 * u - 1.0
    w = -jnp.log((1.0 - xg) * (1.0 + xg))                    # in (0, ~16.6]

    wc = w - 2.5                                             # central branch (w < 5)
    p = jnp.float32(2.81022636e-08)
    p = 3.43273939e-07 + p * wc
    p = -3.5233877e-06 + p * wc
    p = -4.39150654e-06 + p * wc
    p = 0.00021858087 + p * wc
    p = -0.00125372503 + p * wc
    p = -0.00417768164 + p * wc
    p = 0.246640727 + p * wc
    p_central = 1.50140941 + p * wc

    wt = jnp.sqrt(w) - 3.0                                   # tail branch (w >= 5)
    q = jnp.float32(-0.000200214257)
    q = 0.000100950558 + q * wt
    q = 0.00134934322 + q * wt
    q = -0.00367342844 + q * wt
    q = 0.00573950773 + q * wt
    q = -0.0076224613 + q * wt
    q = 0.00943887047 + q * wt
    q = 1.00167406 + q * wt
    p_tail = 2.83297682 + q * wt

    erfinv = jnp.where(w < 5.0, p_central, p_tail) * xg
    z = jnp.float32(math.sqrt(2.0)) * erfinv                 # ~ N(0, 1)

    noise = z * jnp.float32(std)
    if mean != 0.0:                                          # trace-time branch
        noise = noise + jnp.float32(mean)
    o_ref[...] = (x_ref[...].astype(jnp.float32) + noise).astype(o_ref.dtype)


def gaussian_noise(image, *, var=0.3, mean=0.0, seed=0):
    """image: any-shape float array (e.g. NCHW). Returns image + N(mean, var) noise."""
    orig_shape = image.shape
    total = image.size

    LANES = 512          # lane-dense last dim (multiple of 128 -> unmasked stores)
    BLOCK_ROWS = 512     # (512, 512) f32 block = 1 MiB per buffer

    rows = pl.cdiv(total, LANES)
    if rows < BLOCK_ROWS:
        rows_p = ((rows + 7) // 8) * 8                       # sublane-align, 1 block
        tile_rows = rows_p
    else:
        rows_p = ((rows + BLOCK_ROWS - 1) // BLOCK_ROWS) * BLOCK_ROWS
        tile_rows = BLOCK_ROWS
    padded = rows_p * LANES

    flat = image.reshape(-1)
    if padded != total:
        flat = jnp.pad(flat, (0, padded - total))
    x2 = flat.reshape(rows_p, LANES)                         # lane-dense 2D slab

    seed_arr = jnp.array([seed], dtype=jnp.int32)
    kernel = functools.partial(
        _gaussian_noise_kernel, std=float(var) ** 0.5, mean=float(mean)
    )

    out2 = pl.pallas_call(
        kernel,
        out_shape=jax.ShapeDtypeStruct(x2.shape, x2.dtype),
        grid=(rows_p // tile_rows,),
        in_specs=[
            pl.BlockSpec(memory_space=pltpu.SMEM),           # seed scalar
            pl.BlockSpec((tile_rows, LANES), lambda i: (i, 0)),
        ],
        out_specs=pl.BlockSpec((tile_rows, LANES), lambda i: (i, 0)),
        input_output_aliases={1: 0},                         # write noise in place
        compiler_params=pltpu.CompilerParams(
            dimension_semantics=("parallel",),
        ),
    )(seed_arr, x2)

    return out2.reshape(-1)[:total].reshape(orig_shape)


if __name__ == "__main__":
    key = jax.random.PRNGKey(0)
    x = jax.random.uniform(key, (2, 4, 16, 16), dtype=jnp.float32)

    out = gaussian_noise(x, var=0.3, mean=0.0, seed=1234)
    out = jax.block_until_ready(out)

    assert out.shape == x.shape and out.dtype == x.dtype

    # Sanity: noise should have ~zero mean and std ~ sqrt(0.3).
    noise = out - x
    m = float(jnp.mean(noise))
    s = float(jnp.std(noise))
    assert abs(m) < 0.15, f"noise mean off: {m}"
    assert abs(s - 0.3 ** 0.5) < 0.15, f"noise std off: {s}"

    print("KERNEL_OK")
</pallas_src>

<mosaic_0001>
module attributes {stable_mosaic.version = 11 : i64} {
  func.func @_gaussian_noise_kernel(%arg0: i32, %arg1: memref<1xi32, #tpu.memory_space<smem>>, %arg2: memref<8x512xf32, #tpu.memory_space<vmem>>, %arg3: memref<8x512xf32, #tpu.memory_space<vmem>>) attributes {dimension_semantics = [#tpu.dimension_semantics<parallel>], iteration_bounds = array<i64: 1>, scalar_prefetch = 0 : i64, scratch_operands = 0 : i64, tpu.core_type = #tpu.core_type<tc>, window_params = [{transform_indices = @transform_0, window_bounds = array<i64: 1>}, {transform_indices = @transform_1, window_bounds = array<i64: 8, 512>}, {transform_indices = @transform_2, window_bounds = array<i64: 8, 512>}]} {
    %0 = tpu.iota {dimensions = array<i32: 0>} : vector<8x512xi32>
    %1 = tpu.iota {dimensions = array<i32: 1>} : vector<8x512xi32>
    %c8_i32 = arith.constant 8 : i32
    %2 = arith.muli %arg0, %c8_i32 : i32
    %3 = vector.broadcast %2 : i32 to vector<8x512xi32>
    %4 = arith.addi %3, %0 : vector<8x512xi32>
    %c512_i32 = arith.constant 512 : i32
    %5 = vector.broadcast %c512_i32 : i32 to vector<8x512xi32>
    %6 = arith.muli %4, %5 : vector<8x512xi32>
    %7 = arith.addi %6, %1 : vector<8x512xi32>
    %c0 = arith.constant 0 : index
    %8 = memref.load %arg1[%c0] : memref<1xi32, #tpu.memory_space<smem>>
    %c-1640531527_i32 = arith.constant -1640531527 : i32
    %9 = arith.muli %8, %c-1640531527_i32 : i32
    %10 = vector.broadcast %9 : i32 to vector<8x512xi32>
    %11 = arith.addi %7, %10 : vector<8x512xi32>
    %c-1640531535_i32 = arith.constant -1640531535 : i32
    %12 = vector.broadcast %c-1640531535_i32 : i32 to vector<8x512xi32>
    %13 = arith.muli %11, %12 : vector<8x512xi32>
    %c16_i32 = arith.constant 16 : i32
    %14 = vector.broadcast %c16_i32 : i32 to vector<8x512xi32>
    %15 = arith.shrui %13, %14 : vector<8x512xi32>
    %16 = arith.xori %13, %15 : vector<8x512xi32>
    %c-2048144789_i32 = arith.constant -2048144789 : i32
    %17 = vector.broadcast %c-2048144789_i32 : i32 to vector<8x512xi32>
    %18 = arith.muli %16, %17 : vector<8x512xi32>
    %c13_i32 = arith.constant 13 : i32
    %19 = vector.broadcast %c13_i32 : i32 to vector<8x512xi32>
    %20 = arith.shrui %18, %19 : vector<8x512xi32>
    %21 = arith.xori %18, %20 : vector<8x512xi32>
    %c-1028477387_i32 = arith.constant -1028477387 : i32
    %22 = vector.broadcast %c-1028477387_i32 : i32 to vector<8x512xi32>
    %23 = arith.muli %21, %22 : vector<8x512xi32>
    %c16_i32_0 = arith.constant 16 : i32
    %24 = vector.broadcast %c16_i32_0 : i32 to vector<8x512xi32>
    %25 = arith.shrui %23, %24 : vector<8x512xi32>
    %26 = arith.xori %23, %25 : vector<8x512xi32>
    %c8_i32_1 = arith.constant 8 : i32
    %27 = vector.broadcast %c8_i32_1 : i32 to vector<8x512xi32>
    %28 = arith.shrui %26, %27 : vector<8x512xi32>
    %29 = arith.sitofp %28 : vector<8x512xi32> to vector<8x512xf32>
    %cst = arith.constant 5.000000e-01 : f32
    %30 = vector.broadcast %cst : f32 to vector<8x512xf32>
    %31 = arith.addf %29, %30 : vector<8x512xf32>
    %cst_2 = arith.constant 5.96046448E-8 : f32
    %32 = vector.broadcast %cst_2 : f32 to vector<8x512xf32>
    %33 = arith.mulf %31, %32 : vector<8x512xf32>
    %cst_3 = arith.constant 2.000000e+00 : f32
    %34 = vector.broadcast %cst_3 : f32 to vector<8x512xf32>
    %35 = arith.mulf %34, %33 : vector<8x512xf32>
    %cst_4 = arith.constant 1.000000e+00 : f32
    %36 = vector.broadcast %cst_4 : f32 to vector<8x512xf32>
    %37 = arith.subf %35, %36 : vector<8x512xf32>
    %cst_5 = arith.constant 1.000000e+00 : f32
    %38 = vector.broadcast %cst_5 : f32 to vector<8x512xf32>
    %39 = arith.subf %38, %37 : vector<8x512xf32>
    %cst_6 = arith.constant 1.000000e+00 : f32
    %40 = vector.broadcast %cst_6 : f32 to vector<8x512xf32>
    %41 = arith.addf %40, %37 : vector<8x512xf32>
    %42 = arith.mulf %39, %41 : vector<8x512xf32>
    %43 = math.log %42 : vector<8x512xf32>
    %cst_7 = arith.constant 0.000000e+00 : f32
    %44 = vector.broadcast %cst_7 : f32 to vector<8x512xf32>
    %45 = arith.subf %44, %43 : vector<8x512xf32>
    %cst_8 = arith.constant 2.500000e+00 : f32
    %46 = vector.broadcast %cst_8 : f32 to vector<8x512xf32>
    %47 = arith.subf %45, %46 : vector<8x512xf32>
    %cst_9 = arith.constant 2.81022636E-8 : f32
    %48 = vector.broadcast %cst_9 : f32 to vector<8x512xf32>
    %49 = arith.mulf %48, %47 : vector<8x512xf32>
    %cst_10 = arith.constant 3.43273939E-7 : f32
    %50 = vector.broadcast %cst_10 : f32 to vector<8x512xf32>
    %51 = arith.addf %50, %49 : vector<8x512xf32>
    %52 = arith.mulf %51, %47 : vector<8x512xf32>
    %cst_11 = arith.constant -3.5233877E-6 : f32
    %53 = vector.broadcast %cst_11 : f32 to vector<8x512xf32>
    %54 = arith.addf %53, %52 : vector<8x512xf32>
    %55 = arith.mulf %54, %47 : vector<8x512xf32>
    %cst_12 = arith.constant -4.39150654E-6 : f32
    %56 = vector.broadcast %cst_12 : f32 to vector<8x512xf32>
    %57 = arith.addf %56, %55 : vector<8x512xf32>
    %58 = arith.mulf %57, %47 : vector<8x512xf32>
    %cst_13 = arith.constant 2.1858087E-4 : f32
    %59 = vector.broadcast %cst_13 : f32 to vector<8x512xf32>
    %60 = arith.addf %59, %58 : vector<8x512xf32>
    %61 = arith.mulf %60, %47 : vector<8x512xf32>
    %cst_14 = arith.constant -0.00125372503 : f32
    %62 = vector.broadcast %cst_14 : f32 to vector<8x512xf32>
    %63 = arith.addf %62, %61 : vector<8x512xf32>
    %64 = arith.mulf %63, %47 : vector<8x512xf32>
    %cst_15 = arith.constant -0.00417768164 : f32
    %65 = vector.broadcast %cst_15 : f32 to vector<8x512xf32>
    %66 = arith.addf %65, %64 : vector<8x512xf32>
    %67 = arith.mulf %66, %47 : vector<8x512xf32>
    %cst_16 = arith.constant 0.246640727 : f32
    %68 = vector.broadcast %cst_16 : f32 to vector<8x512xf32>
    %69 = arith.addf %68, %67 : vector<8x512xf32>
    %70 = arith.mulf %69, %47 : vector<8x512xf32>
    %cst_17 = arith.constant 1.50140941 : f32
    %71 = vector.broadcast %cst_17 : f32 to vector<8x512xf32>
    %72 = arith.addf %71, %70 : vector<8x512xf32>
    %73 = math.sqrt %45 : vector<8x512xf32>
    %cst_18 = arith.constant 3.000000e+00 : f32
    %74 = vector.broadcast %cst_18 : f32 to vector<8x512xf32>
    %75 = arith.subf %73, %74 : vector<8x512xf32>
    %cst_19 = arith.constant -2.00214257E-4 : f32
    %76 = vector.broadcast %cst_19 : f32 to vector<8x512xf32>
    %77 = arith.mulf %76, %75 : vector<8x512xf32>
    %cst_20 = arith.constant 1.00950558E-4 : f32
    %78 = vector.broadcast %cst_20 : f32 to vector<8x512xf32>
    %79 = arith.addf %78, %77 : vector<8x512xf32>
    %80 = arith.mulf %79, %75 : vector<8x512xf32>
    %cst_21 = arith.constant 0.00134934322 : f32
    %81 = vector.broadcast %cst_21 : f32 to vector<8x512xf32>
    %82 = arith.addf %81, %80 : vector<8x512xf32>
    %83 = arith.mulf %82, %75 : vector<8x512xf32>
    %cst_22 = arith.constant -0.00367342844 : f32
    %84 = vector.broadcast %cst_22 : f32 to vector<8x512xf32>
    %85 = arith.addf %84, %83 : vector<8x512xf32>
    %86 = arith.mulf %85, %75 : vector<8x512xf32>
    %cst_23 = arith.constant 0.00573950773 : f32
    %87 = vector.broadcast %cst_23 : f32 to vector<8x512xf32>
    %88 = arith.addf %87, %86 : vector<8x512xf32>
    %89 = arith.mulf %88, %75 : vector<8x512xf32>
    %cst_24 = arith.constant -0.0076224613 : f32
    %90 = vector.broadcast %cst_24 : f32 to vector<8x512xf32>
    %91 = arith.addf %90, %89 : vector<8x512xf32>
    %92 = arith.mulf %91, %75 : vector<8x512xf32>
    %cst_25 = arith.constant 0.00943887047 : f32
    %93 = vector.broadcast %cst_25 : f32 to vector<8x512xf32>
    %94 = arith.addf %93, %92 : vector<8x512xf32>
    %95 = arith.mulf %94, %75 : vector<8x512xf32>
    %cst_26 = arith.constant 1.00167406 : f32
    %96 = vector.broadcast %cst_26 : f32 to vector<8x512xf32>
    %97 = arith.addf %96, %95 : vector<8x512xf32>
    %98 = arith.mulf %97, %75 : vector<8x512xf32>
    %cst_27 = arith.constant 2.83297682 : f32
    %99 = vector.broadcast %cst_27 : f32 to vector<8x512xf32>
    %100 = arith.addf %99, %98 : vector<8x512xf32>
    %cst_28 = arith.constant 5.000000e+00 : f32
    %101 = vector.broadcast %cst_28 : f32 to vector<8x512xf32>
    %102 = arith.cmpf olt, %45, %101 : vector<8x512xf32>
    %103 = arith.select %102, %72, %100 : vector<8x512xi1>, vector<8x512xf32>
    %104 = arith.mulf %103, %37 : vector<8x512xf32>
    %cst_29 = arith.constant 1.41421354 : f32
    %105 = vector.broadcast %cst_29 : f32 to vector<8x512xf32>
    %106 = arith.mulf %105, %104 : vector<8x512xf32>
    %cst_30 = arith.constant 0.547722578 : f32
    %107 = vector.broadcast %cst_30 : f32 to vector<8x512xf32>
    %108 = arith.mulf %106, %107 : vector<8x512xf32>
    %c0_31 = arith.constant 0 : index
    %c0_32 = arith.constant 0 : index
    %109 = vector.load %arg2[%c0_31, %c0_32] : memref<8x512xf32, #tpu.memory_space<vmem>>, vector<8x512xf32>
    %110 = arith.addf %109, %108 : vector<8x512xf32>
    %c0_33 = arith.constant 0 : index
    %c0_34 = arith.constant 0 : index
    %111 = vector.load %arg3[%c0_33, %c0_34] : memref<8x512xf32, #tpu.memory_space<vmem>>, vector<8x512xf32>
    tpu.vector_store %arg3[%c0_33, %c0_34], %110 {strides = array<i32>} : memref<8x512xf32, #tpu.memory_space<vmem>>, vector<8x512xf32>,
    return
  }
  func.func @transform_0(%arg0: i32) -> i32 {
    %c0_i32 = arith.constant 0 : i32
    %c0_i32_0 = arith.constant 0 : i32
    return %c0_i32 : i32
  }
  func.func @transform_1(%arg0: i32) -> (i32, i32) {
    %c0_i32 = arith.constant 0 : i32
    %c0_i32_0 = arith.constant 0 : i32
    return %arg0, %c0_i32 : i32, i32
  }
  func.func @transform_2(%arg0: i32) -> (i32, i32) {
    %c0_i32 = arith.constant 0 : i32
    %c0_i32_0 = arith.constant 0 : i32
    return %arg0, %c0_i32 : i32, i32
  }
}

</mosaic_0001>

<bundles_post_ra>
// kernel: tpu_custom_call.1
= control target key start
LH: loop header
LB: loop body
LE: loop exit
PB: predicated region body
PF: predicated region fallthrough
CT: control target
= control target key end

     0   :  { %8 = vsyncpa [#allocation4], 0  ;;  %s594_s0 = inlined_call_operand.<no memory space> [shape: s32[1], index: 0, kind: input, shape index: {}]   ;;  %s595_s1 = inlined_call_operand.hbm [shape: f32[8,512], index: 1, kind: input, shape index: {}, may-alias: {1,2}]   ;;  %s596_s2 = inlined_call_operand.hbm [shape: f32[8,512], index: 2, kind: output, shape index: {}, may-alias: {1,2}]  }
   0x1   :  { %9 = vsyncpa [#allocation5], 0  ;;  %s416_s9 = smov [#allocation3]  }
   0x2   :  { %s18_s10 = sshll.u32 %s416_s9, 4  ;;  %s19_s10 = int_to_ptr.vmem [resolvable:$true] %s18_s10 }
   0x3   :  { %s380_s11 = scalar_lea.vmem %s19_s10, 512  ;;  %p385_p1 = scmp.lt.s32.totalorder %s19_s10, %s19_s10 }
   0x4   :  { %p381_p0 = scmp.ne.s32.totalorder %s19_s10, %s380_s11  ;;  %p386_p2 = scmp.lt.s32.totalorder %s380_s11, %s380_s11 }
   0x6   :  { %p387_p3 = por %p386_p2, %p385_p1 }
   0x8   :  { %p388_p4 = pnand %p387_p3, %p381_p0 }
   0xa   :  { %391 = shalt.err (!%p388_p4)
}
   0xb   :  { %21 = dma.hbm_to_vmem [thread:$0]  %s595_s1, 512, %s19_s10, [#allocation4]  }
   0xc   :  { %412 = dma.done.wait [#allocation4], 512  }
   0xd   :  { %413 = vsyncadd [#allocation4], 4294966784  ;;  %v25_v0 = vlaneseq  ;;  %s41_s16 = smul.u32 2654435769, %s594_s0  ;;  %s417_s0 = smov [#allocation6]  }
   0xe   :  { %s333_s1 = sshll.u32 %s417_s0, 4  ;;  %s334_s1 = int_to_ptr.vmem [resolvable:$true] %s333_s1 }
   0xf   :  { %v26_v1 = vshrl.u32 %v25_v0, 7  ;;  %v28_v2 = vand.u32 127, %v25_v0  ;;  %v42_v7 = vstv %s41_s16  ;;  %s392_s17 = scalar_lea.vmem %s334_s1, 512  ;;  %p397_p6 = scmp.lt.s32.totalorder %s334_s1, %s334_s1 }
  0x10   :  { %p393_p5 = scmp.ne.s32.totalorder %s334_s1, %s392_s17  ;;  %p398_p7 = scmp.lt.s32.totalorder %s392_s17, %s392_s17 }
  0x11   :  { %v35_v3 = vmul.u32 512, %v26_v1  ;;  %v29_v4 = vadd.s32 128, %v28_v2  ;;  %v30_v5 = vadd.s32 256, %v28_v2  ;;  %v31_v6 = vadd.s32 384, %v28_v2 }
  0x12   :  { %p399_p8 = por %p398_p7, %p397_p6 }
  0x13   :  { %v36_v8 = vadd.s32 %v35_v3, %v28_v2  ;;  %v37_v9 = vadd.s32 %v35_v3, %v29_v4  ;;  %v38_v10 = vadd.s32 %v35_v3, %v30_v5  ;;  %v39_v11 = vadd.s32 %v35_v3, %v31_v6 }
  0x14   :  { %p400_p9 = pnand %p399_p8, %p393_p5 }
  0x15   :  { %v43_v12 = vadd.s32 %v42_v7, %v36_v8  ;;  %v44_v13 = vadd.s32 %v42_v7, %v37_v9  ;;  %v45_v14 = vadd.s32 %v42_v7, %v38_v10  ;;  %v46_v15 = vadd.s32 %v42_v7, %v39_v11 }
  0x17   :  { %v47_v16 = vmul.u32 2654435761, %v43_v12  ;;  %v48_v17 = vmul.u32 2654435761, %v44_v13 }
  0x18   :  { %v49_v18 = vmul.u32 2654435761, %v45_v14  ;;  %v50_v19 = vmul.u32 2654435761, %v46_v15 }
  0x19   :  { %v51_v20 = vshrl.u32 %v47_v16, 16  ;;  %v52_v21 = vshrl.u32 %v48_v17, 16 }
  0x1a   :  { %v53_v22 = vshrl.u32 %v49_v18, 16  ;;  %v54_v23 = vshrl.u32 %v50_v19, 16 }
  0x1b   :  { %v55_v24 = vxor.u32 %v51_v20, %v47_v16  ;;  %v56_v25 = vxor.u32 %v52_v21, %v48_v17 }
  0x1c   :  { %v57_v26 = vxor.u32 %v53_v22, %v49_v18  ;;  %v58_v27 = vxor.u32 %v54_v23, %v50_v19 }
  0x1d   :  { %v59_v28 = vmul.u32 2246822507, %v55_v24  ;;  %v60_v29 = vmul.u32 2246822507, %v56_v25 }
  0x1e   :  { %v61_v30 = vmul.u32 2246822507, %v57_v26  ;;  %v62_v31 = vmul.u32 2246822507, %v58_v27 }
  0x1f   :  { %v63_v32 = vshrl.u32 %v59_v28, 13  ;;  %v64_v33 = vshrl.u32 %v60_v29, 13 }
  0x20   :  { %v65_v34 = vshrl.u32 %v61_v30, 13  ;;  %v66_v35 = vshrl.u32 %v62_v31, 13 }
  0x21   :  { %v67_v36 = vxor.u32 %v63_v32, %v59_v28  ;;  %v68_v37 = vxor.u32 %v64_v33, %v60_v29 }
  0x22   :  { %v69_v38 = vxor.u32 %v65_v34, %v61_v30  ;;  %v70_v39 = vxor.u32 %v66_v35, %v62_v31 }
  0x23   :  { %v71_v40 = vmul.u32 3266489909, %v67_v36  ;;  %v72_v41 = vmul.u32 3266489909, %v68_v37 }
  0x24   :  { %v73_v42 = vmul.u32 3266489909, %v69_v38  ;;  %v74_v43 = vmul.u32 3266489909, %v70_v39 }
  0x25   :  { %v75_v44 = vshrl.u32 %v71_v40, 16  ;;  %v76_v45 = vshrl.u32 %v72_v41, 16 }
  0x26   :  { %v77_v46 = vshrl.u32 %v73_v42, 16  ;;  %v78_v47 = vshrl.u32 %v74_v43, 16 }
  0x27   :  { %v79_v48 = vxor.u32 %v75_v44, %v71_v40  ;;  %v80_v49 = vxor.u32 %v76_v45, %v72_v41 }
  0x28   :  { %v81_v50 = vxor.u32 %v77_v46, %v73_v42  ;;  %v82_v51 = vxor.u32 %v78_v47, %v74_v43 }
  0x29   :  { %v83_v52 = vshrl.u32 %v79_v48, 8  ;;  %v84_v53 = vshrl.u32 %v80_v49, 8 }
  0x2a   :  { %v85_v54 = vshrl.u32 %v81_v50, 8  ;;  %v86_v55 = vshrl.u32 %v82_v51, 8 }
  0x2b   :  { %v87_v56 = vcvt.s32.f32 %v83_v52  ;;  %v88_v57 = vcvt.s32.f32 %v84_v53 }
  0x2c   :  { %v89_v58 = vcvt.s32.f32 %v85_v54  ;;  %v90_v59 = vcvt.s32.f32 %v86_v55 }
  0x2d   :  { %v91_v60 = vadd.f32 0.5, %v87_v56  ;;  %v92_v61 = vadd.f32 0.5, %v88_v57 }
  0x2e   :  { %v93_v62 = vadd.f32 0.5, %v89_v58  ;;  %v94_v63 = vadd.f32 0.5, %v90_v59 }
  0x2f   :  { %v95_v0 = vmul.f32 5.9604645e-08, %v91_v60  ;;  %v96_v1 = vmul.f32 5.9604645e-08, %v92_v61 }
  0x30   :  { %v97_v2 = vmul.f32 5.9604645e-08, %v93_v62  ;;  %v98_v3 = vmul.f32 5.9604645e-08, %v94_v63 }
  0x31   :  { %v99_v4 = vmul.f32 2.0, %v95_v0  ;;  %v100_v5 = vmul.f32 2.0, %v96_v1 }
  0x32   :  { %v101_v6 = vmul.f32 2.0, %v97_v2  ;;  %v102_v7 = vmul.f32 2.0, %v98_v3 }
  0x33   :  { %v439_v8 = vadd.f32 -1.0, %v99_v4  ;;  %v441_v9 = vadd.f32 -1.0, %v100_v5 }
  0x34   :  { %v443_v10 = vadd.f32 -1.0, %v101_v6  ;;  %v445_v11 = vadd.f32 -1.0, %v102_v7 }
  0x35   :  { %v107_v12 = vsub.f32 1.0, %v439_v8  ;;  %v111_v13 = vadd.f32 1.0, %v439_v8  ;;  %v108_v14 = vsub.f32 1.0, %v441_v9  ;;  %v112_v15 = vadd.f32 1.0, %v441_v9 }
  0x36   :  { %v109_v16 = vsub.f32 1.0, %v443_v10  ;;  %v113_v17 = vadd.f32 1.0, %v443_v10  ;;  %v110_v18 = vsub.f32 1.0, %v445_v11  ;;  %v114_v19 = vadd.f32 1.0, %v445_v11 }
  0x37   :  { %v115_v20 = vmul.f32 %v111_v13, %v107_v12  ;;  %v116_v21 = vmul.f32 %v112_v15, %v108_v14 }
  0x38   :  { %v117_v22 = vmul.f32 %v113_v17, %v109_v16  ;;  %v118_v23 = vmul.f32 %v114_v19, %v110_v18 }
  0x39   :  { %356 = vlog2.f32 %v115_v20 }
  0x3a   :  { %358 = vlog2.f32 %v116_v21 }
  0x3b   :  { %360 = vlog2.f32 %v117_v22 }
  0x3c   :  { %362 = vlog2.f32 %v118_v23 }
  0x46   :  { %v357_v24 = vpop.eup %356 }
  0x47   :  { %v359_v25 = vpop.eup %358  ;;  %v120_v26 = vmul.f32 0.6931472, %v357_v24 }
  0x48   :  { %v361_v27 = vpop.eup %360  ;;  %v122_v28 = vmul.f32 0.6931472, %v359_v25 }
  0x49   :  { %v363_v29 = vpop.eup %362  ;;  %v455_v30 = vsub.f32 0.0, %v120_v26  ;;  %v124_v32 = vmul.f32 0.6931472, %v361_v27 }
  0x4a   :  { %v457_v31 = vsub.f32 0.0, %v122_v28  ;;  %v126_v34 = vmul.f32 0.6931472, %v363_v29 }
  0x4b   :  { %v460_v33 = vadd.f32 -2.5, %v455_v30  ;;  %364 = vrsqrt.f32 %v455_v30  ;;  %v469_v38 = vsub.f32 0.0, %v124_v32  ;;  %vm201_vm0 = vcmp.eq.f32.partialorder %v455_v30, inf }
  0x4c   :  { %v464_v35 = vadd.f32 -2.5, %v457_v31  ;;  %366 = vrsqrt.f32 %v457_v31  ;;  %v471_v40 = vsub.f32 0.0, %v126_v34  ;;  %vm203_vm1 = vcmp.eq.f32.partialorder %v455_v30, 0.0 }
  0x4d   :  { %v135_v36 = vmul.f32 2.8102264e-08, %v460_v33  ;;  %v474_v42 = vadd.f32 -2.5, %v469_v38  ;;  %368 = vrsqrt.f32 %v469_v38  ;;  %v204_v56 = vand.u32 2147483648, %v455_v30 }
  0x4e   :  { %v136_v37 = vmul.f32 2.8102264e-08, %v464_v35  ;;  %v481_v46 = vadd.f32 -2.5, %v471_v40  ;;  %370 = vrsqrt.f32 %v471_v40  ;;  %vm208_vm2 = vcmp.eq.f32.partialorder %v457_v31, inf }
  0x4f   :  { %v139_v39 = vadd.f32 3.4327394e-07, %v135_v36  ;;  %v137_v45 = vmul.f32 2.8102264e-08, %v474_v42  ;;  %vm210_vm3 = vcmp.eq.f32.partialorder %v457_v31, 0.0  ;;  %v211_v0 = vand.u32 2147483648, %v457_v31 }
  0x50   :  { %v140_v41 = vadd.f32 3.4327394e-07, %v136_v37  ;;  %v138_v50 = vmul.f32 2.8102264e-08, %v481_v46  ;;  %vm215_vm4 = vcmp.eq.f32.partialorder %v469_v38, inf  ;;  %v218_v18 = vand.u32 2147483648, %v469_v38 }
  0x51   :  { %v143_v43 = vmul.f32 %v460_v33, %v139_v39  ;;  %v141_v49 = vadd.f32 3.4327394e-07, %v137_v45  ;;  %vm217_vm5 = vcmp.eq.f32.partialorder %v469_v38, 0.0  ;;  %vm222_vm6 = vcmp.eq.f32.partialorder %v471_v40, inf }
  0x52   :  { %v144_v44 = vmul.f32 %v464_v35, %v140_v41  ;;  %v142_v54 = vadd.f32 3.4327394e-07, %v138_v50  ;;  %vm224_vm7 = vcmp.eq.f32.partialorder %v471_v40, 0.0  ;;  %v225_v41 = vand.u32 2147483648, %v471_v40 }
  0x53   :  { %v147_v47 = vadd.f32 -3.5233877e-06, %v143_v43  ;;  %v145_v53 = vmul.f32 %v474_v42, %v141_v49  ;;  %vm295_vm8 = vcmp.lt.f32.partialorder %v455_v30, 5.0  ;;  %vm296_vm9 = vcmp.lt.f32.partialorder %v457_v31, 5.0 }
  0x54   :  { %v148_v48 = vadd.f32 -3.5233877e-06, %v144_v44  ;;  %v146_v60 = vmul.f32 %v481_v46, %v142_v54  ;;  %vm297_vm10 = vcmp.lt.f32.partialorder %v469_v38, 5.0  ;;  %vm298_vm11 = vcmp.lt.f32.partialorder %v471_v40, 5.0 }
  0x55   :  { %v151_v51 = vmul.f32 %v460_v33, %v147_v47  ;;  %v149_v59 = vadd.f32 -3.5233877e-06, %v145_v53 }
  0x56   :  { %v152_v52 = vmul.f32 %v464_v35, %v148_v48  ;;  %v150_v4 = vadd.f32 -3.5233877e-06, %v146_v60 }
  0x57   :  { %v155_v55 = vadd.f32 -4.3915065e-06, %v151_v51  ;;  %v153_v3 = vmul.f32 %v474_v42, %v149_v59 }
  0x58   :  { %v365_v57 = vpop.eup %364  ;;  %v156_v58 = vadd.f32 -4.3915065e-06, %v152_v52  ;;  %v154_v19 = vmul.f32 %v481_v46, %v150_v4 }
  0x59   :  { %v367_v61 = vpop.eup %366  ;;  %v159_v62 = vmul.f32 %v460_v33, %v155_v55  ;;  %v200_v63 = vmul.f32 %v365_v57, %v455_v30  ;;  %v157_v14 = vadd.f32 -4.3915065e-06, %v153_v3 }
  0x5a   :  { %v160_v1 = vmul.f32 %v464_v35, %v156_v58  ;;  %v207_v2 = vmul.f32 %v367_v61, %v457_v31  ;;  %v369_v15 = vpop.eup %368  ;;  %v158_v25 = vadd.f32 -4.3915065e-06, %v154_v19 }
  0x5b   :  { %v163_v5 = vadd.f32 0.00021858087, %v159_v62  ;;  %v202_v6 = vsel %vm201_vm0, %v455_v30, %v200_v63  ;;  %v161_v21 = vmul.f32 %v474_v42, %v157_v14  ;;  %v214_v22 = vmul.f32 %v369_v15, %v469_v38  ;;  %v371_v26 = vpop.eup %370 }
  0x5c   :  { %v205_v7 = vsel %vm203_vm1, %v204_v56, %v202_v6  ;;  %v164_v12 = vadd.f32 0.00021858087, %v160_v1  ;;  %v209_v13 = vsel %vm208_vm2, %v457_v31, %v207_v2  ;;  %v162_v45 = vmul.f32 %v481_v46, %v158_v25 }
  0x5d   :  { %v509_v16 = vadd.f32 -3.0, %v205_v7  ;;  %v212_v17 = vsel %vm210_vm3, %v211_v0, %v209_v13  ;;  %v167_v23 = vmul.f32 %v460_v33, %v163_v5  ;;  %v165_v29 = vadd.f32 0.00021858087, %v161_v21 }
  0x5e   :  { %v513_v20 = vadd.f32 -3.0, %v212_v17  ;;  %v168_v27 = vmul.f32 %v464_v35, %v164_v12  ;;  %v216_v32 = vsel %vm215_vm4, %v469_v38, %v214_v22  ;;  %v221_v47 = vmul.f32 %v371_v26, %v471_v40 }
  0x5f   :  { %v231_v24 = vmul.f32 -0.00020021426, %v509_v16  ;;  %v219_v36 = vsel %vm217_vm5, %v218_v18, %v216_v32  ;;  %v171_v43 = vadd.f32 -0.001253725, %v167_v23  ;;  %v169_v50 = vmul.f32 %v474_v42, %v165_v29 }
  0x60   :  { %v232_v28 = vmul.f32 -0.00020021426, %v513_v20  ;;  %v526_v39 = vadd.f32 -3.0, %v219_v36  ;;  %v172_v48 = vadd.f32 -0.001253725, %v168_v27  ;;  %v223_v53 = vsel %vm222_vm6, %v471_v40, %v221_v47 }
  0x61   :  { %v235_v34 = vadd.f32 0.00010095056, %v231_v24  ;;  %v175_v56 = vmul.f32 %v460_v33, %v171_v43  ;;  %v166_v58 = vadd.f32 0.00021858087, %v162_v45  ;;  %v226_v59 = vsel %vm224_vm7, %v225_v41, %v223_v53 }
  0x62   :  { %v236_v37 = vadd.f32 0.00010095056, %v232_v28  ;;  %v233_v51 = vmul.f32 -0.00020021426, %v526_v39  ;;  %v176_v60 = vmul.f32 %v464_v35, %v172_v48  ;;  %v173_v62 = vadd.f32 -0.001253725, %v169_v50 }
  0x63   :  { %v239_v44 = vmul.f32 %v509_v16, %v235_v34  ;;  %v544_v1 = vadd.f32 -3.0, %v226_v59  ;;  %v179_v4 = vadd.f32 -0.0041776816, %v175_v56  ;;  %v170_v6 = vmul.f32 %v481_v46, %v166_v58 }
  0x64   :  { %v240_v49 = vmul.f32 %v513_v20, %v236_v37  ;;  %v237_v55 = vadd.f32 0.00010095056, %v233_v51  ;;  %v180_v12 = vadd.f32 -0.0041776816, %v176_v60  ;;  %v177_v14 = vmul.f32 %v474_v42, %v173_v62 }
  0x65   :  { %v243_v52 = vadd.f32 0.0013493432, %v239_v44  ;;  %v234_v7 = vmul.f32 -0.00020021426, %v544_v1  ;;  %v183_v22 = vmul.f32 %v460_v33, %v179_v4  ;;  %v174_v24 = vadd.f32 -0.001253725, %v170_v6 }
  0x66   :  { %v244_v54 = vadd.f32 0.0013493432, %v240_v49  ;;  %v241_v63 = vmul.f32 %v526_v39, %v237_v55  ;;  %v184_v26 = vmul.f32 %v464_v35, %v180_v12  ;;  %v181_v28 = vadd.f32 -0.0041776816, %v177_v14 }
  0x67   :  { %v247_v57 = vmul.f32 %v509_v16, %v243_v52  ;;  %v238_v18 = vadd.f32 0.00010095056, %v234_v7  ;;  %v187_v41 = vadd.f32 0.24664073, %v183_v22  ;;  %v178_v44 = vmul.f32 %v481_v46, %v174_v24 }
  0x68   :  { %v248_v61 = vmul.f32 %v513_v20, %v244_v54  ;;  %v245_v3 = vadd.f32 0.0013493432, %v241_v63  ;;  %v188_v47 = vadd.f32 0.24664073, %v184_v26  ;;  %v185_v49 = vmul.f32 %v474_v42, %v181_v28 }
  0x69   :  { %v251_v0 = vadd.f32 -0.0036734284, %v247_v57  ;;  %v242_v25 = vmul.f32 %v544_v1, %v238_v18  ;;  %v191_v55 = vmul.f32 %v460_v33, %v187_v41  ;;  %v182_v57 = vadd.f32 -0.0041776816, %v178_v44 }
  0x6a   :  { %v252_v2 = vadd.f32 -0.0036734284, %v248_v61  ;;  %v249_v15 = vmul.f32 %v526_v39, %v245_v3  ;;  %v192_v59 = vmul.f32 %v464_v35, %v188_v47  ;;  %v189_v61 = vadd.f32 0.24664073, %v185_v49 }
  0x6b   :  { %v255_v5 = vmul.f32 %v509_v16, %v251_v0  ;;  %v246_v34 = vadd.f32 0.0013493432, %v242_v25  ;;  %v195_v4 = vadd.f32 1.5014094, %v191_v55 }
  0x6c   :  { %v256_v13 = vmul.f32 %v513_v20, %v252_v2  ;;  %v253_v21 = vadd.f32 -0.0036734284, %v249_v15  ;;  %v196_v7 = vadd.f32 1.5014094, %v192_v59  ;;  %v193_v12 = vmul.f32 %v474_v42, %v189_v61 }
  0x6d   :  { %v259_v17 = vadd.f32 0.0057395077, %v255_v5  ;;  %v250_v45 = vmul.f32 %v544_v1, %v246_v34  ;;  %v186_v5 = vmul.f32 %v481_v46, %v182_v57  ;;  %v316_v34 = vld [vmem:[#allocation3 + $0x8] sm:$0xff] }
  0x6e   :  { %v260_v19 = vadd.f32 0.0057395077, %v256_v13  ;;  %v257_v29 = vmul.f32 %v526_v39, %v253_v21 }
  0x6f   :  { %v263_v23 = vmul.f32 %v509_v16, %v259_v17  ;;  %v254_v52 = vadd.f32 -0.0036734284, %v250_v45  ;;  %v317_v45 = vld [vmem:[#allocation3 + $0x10] sm:$0xff] }
  0x70   :  { %v264_v27 = vmul.f32 %v513_v20, %v260_v19  ;;  %v261_v37 = vadd.f32 0.0057395077, %v257_v29  ;;  %v190_v19 = vadd.f32 0.24664073, %v186_v5 }
  0x71   :  { %v267_v32 = vadd.f32 -0.0076224613, %v263_v23  ;;  %v258_v58 = vmul.f32 %v544_v1, %v254_v52 }
  0x72   :  { %v268_v36 = vadd.f32 -0.0076224613, %v264_v27  ;;  %v265_v50 = vmul.f32 %v526_v39, %v261_v37  ;;  %v315_v27 = vld [vmem:[#allocation3] sm:$0xff]  ;;  %v194_v30 = vmul.f32 %v481_v46, %v190_v19 }
  0x73   :  { %v271_v43 = vmul.f32 %v509_v16, %v267_v32  ;;  %v262_v0 = vadd.f32 0.0057395077, %v258_v58 }
  0x74   :  { %v272_v48 = vmul.f32 %v513_v20, %v268_v36  ;;  %v269_v54 = vadd.f32 -0.0076224613, %v265_v50  ;;  %v198_v38 = vadd.f32 1.5014094, %v194_v30 }
  0x75   :  { %v275_v51 = vadd.f32 0.0094388705, %v271_v43  ;;  %v266_v6 = vmul.f32 %v544_v1, %v262_v0 }
  0x76   :  { %v276_v53 = vadd.f32 0.0094388705, %v272_v48  ;;  %v273_v62 = vmul.f32 %v526_v39, %v269_v54 }
  0x77   :  { %v279_v56 = vmul.f32 %v509_v16, %v275_v51  ;;  %v270_v15 = vadd.f32 -0.0076224613, %v266_v6  ;;  %v318_v51 = vld [vmem:[#allocation3 + $0x18] sm:$0xff] }
  0x78   :  { %v280_v60 = vmul.f32 %v513_v20, %v276_v53  ;;  %v277_v3 = vadd.f32 0.0094388705, %v273_v62 }
  0x79   :  { %v283_v63 = vadd.f32 1.001674, %v279_v56  ;;  %v274_v21 = vmul.f32 %v544_v1, %v270_v15 }
  0x7a   :  { %v284_v2 = vadd.f32 1.001674, %v280_v60  ;;  %v281_v13 = vmul.f32 %v526_v39, %v277_v3 }
  0x7b   :  { %v287_v33 = vmul.f32 %v509_v16, %v283_v63  ;;  %v278_v31 = vadd.f32 0.0094388705, %v274_v21 }
  0x7c   :  { %v288_v35 = vmul.f32 %v513_v20, %v284_v2  ;;  %v285_v18 = vadd.f32 1.001674, %v281_v13  ;;  %v197_v20 = vadd.f32 1.5014094, %v193_v12 }
  0x7d   :  { %v291_v14 = vadd.f32 2.8329768, %v287_v33  ;;  %v282_v29 = vmul.f32 %v544_v1, %v278_v31 }
  0x7e   :  { %v292_v17 = vadd.f32 2.8329768, %v288_v35  ;;  %v289_v42 = vmul.f32 %v526_v39, %v285_v18 }
  0x7f   :  { %v299_v16 = vsel %vm295_vm8, %v195_v4, %v291_v14  ;;  %v286_v39 = vadd.f32 1.001674, %v282_v29 }
  0x80   :  { %v303_v22 = vmul.f32 %v439_v8, %v299_v16  ;;  %v300_v23 = vsel %vm296_vm9, %v196_v7, %v292_v17  ;;  %v293_v26 = vadd.f32 2.8329768, %v289_v42 }
  0x81   :  { %v304_v24 = vmul.f32 %v441_v9, %v300_v23  ;;  %v290_v44 = vmul.f32 %v544_v1, %v286_v39 }
  0x82   :  { %v307_v25 = vmul.f32 1.4142135, %v303_v22  ;;  %v301_v8 = vsel %vm297_vm10, %v197_v20, %v293_v26 }
  0x83   :  { %v308_v28 = vmul.f32 1.4142135, %v304_v24  ;;  %v305_v37 = vmul.f32 %v443_v10, %v301_v8  ;;  %v294_v47 = vadd.f32 2.8329768, %v290_v44 }
  0x84   :  { %v311_v32 = vmul.f32 0.5477226, %v307_v25 }
  0x85   :  { %v312_v36 = vmul.f32 0.5477226, %v308_v28  ;;  %v309_v43 = vmul.f32 1.4142135, %v305_v37  ;;  %v302_v49 = vsel %vm298_vm11, %v198_v38, %v294_v47 }
  0x86   :  { %v319_v41 = vadd.f32 %v315_v27, %v311_v32  ;;  %v306_v50 = vmul.f32 %v445_v11, %v302_v49 }
  0x87   :  { %v320_v9 = vadd.f32 %v316_v34, %v312_v36  ;;  %v313_v46 = vmul.f32 0.5477226, %v309_v43 }
  0x88   :  { %323 = vst [vmem:[#allocation6] sm:$0xff] %v319_v41  ;;  %v310_v10 = vmul.f32 1.4142135, %v306_v50 }
  0x89   :  { %324 = vst [vmem:[#allocation6 + $0x8] sm:$0xff] %v320_v9  ;;  %v321_v48 = vadd.f32 %v317_v45, %v313_v46 }
  0x8a   :  { %v314_v52 = vmul.f32 0.5477226, %v310_v10 }
  0x8b   :  { %325 = vst [vmem:[#allocation6 + $0x10] sm:$0xff] %v321_v48 }
  0x8c   :  { %v322_v53 = vadd.f32 %v318_v51, %v314_v52 }
  0x8e   :  { %326 = vst [vmem:[#allocation6 + $0x18] sm:$0xff] %v322_v53 }
  0x8f   :  { %403 = shalt.err (!%p400_p9)
}
  0x90   :  { %336 = dma.vmem_to_hbm [thread:$0]  %s334_s1, 512, %s596_s2, [#allocation5]  }
  0x91   :  { %414 = dma.done.wait [#allocation5], 512  }
  0x92   :  { %415 = vsyncadd [#allocation5], 4294966784 }
  0x93   :  { %340 = vsyncpa [#allocation4], 1 }
  0x94   :  { %341 = vsyncpa [#allocation5], 1 }

</bundles_post_ra>
